<compile_context>
chip_gen: v6e
topology: v6e:2x2x1
jax: 0.10.0
libtpu: 0.0.40
codegen_flags: <defaults>
</compile_context>

<pallas_src>
import jax
import jax.numpy as jnp
from jax.experimental import pallas as pl
from jax.experimental.pallas import tpu as pltpu

_LN_EPS = 1e-5  # torch.nn.LayerNorm default


def _sep_norm_linear_kernel(x_ref, gamma_ref, beta_ref, w_ref, o_ref):
    # x_ref:     (tl, C2)  one L-tile of one channel-half of one batch element
    # gamma/beta (1,  C2)  LayerNorm affine params (resident)
    # w_ref:     (C2, C2)  reduction weight, stored as (in, out) == torch W.T (resident)
    x = x_ref[...].astype(jnp.float32)
    mean = jnp.mean(x, axis=-1, keepdims=True)
    xc = x - mean
    var = jnp.mean(xc * xc, axis=-1, keepdims=True)
    inv = jax.lax.rsqrt(var + _LN_EPS)
    xn = xc * inv * gamma_ref[...].astype(jnp.float32) + beta_ref[...].astype(jnp.float32)
    # MXU matmul in the weight's dtype (bf16 if given bf16 params), f32 accumulation.
    y = jnp.dot(xn.astype(w_ref.dtype), w_ref[...], preferred_element_type=jnp.float32)
    o_ref[...] = y.astype(o_ref.dtype)


def _choose_l_tile(L, C2, itemsize):
    """Largest L-tile (multiple of 8, dividing L) whose per-step working set
    (double-buffered x/out tiles + resident weight/params) fits a conservative
    16 MiB budget -- safe for v7x's smaller VMEM as well as v5e/v6e."""
    budget = 16 * 1024 * 1024
    candidates = [t for t in (1024, 512, 256, 128, 64, 32, 16, 8) if L % t == 0]
    for t in candidates:
        need = (4 * t * C2 + C2 * C2 + 2 * C2) * itemsize
        if need <= budget:
            return t
    return candidates[-1] if candidates else L


def patch_separate(x, gamma, beta, w_t):
    """PatchSeparate.forward.

    x:      (B, L, C)  with C even
    gamma:  (C//2,)    LayerNorm weight
    beta:   (C//2,)    LayerNorm bias
    w_t:    (C//2, C//2)  reduction weight stored as (in, out) == torch weight.T
    returns (B, 2*L, C//2)
    """
    B, L, C = x.shape
    C2 = C // 2
    assert C == 2 * C2, "channel dim must be even"
    assert w_t.shape == (C2, C2)

    itemsize = jnp.dtype(x.dtype).itemsize
    tl = _choose_l_tile(L, C2, itemsize)
    grid = (B, 2, L // tl)

    if C2 % 128 == 0:
        # Fast path: fold the 'b l (c1 c2) -> b (c1 l) c2' rearrange into the
        # index_map -- the c1 grid axis selects a lane-aligned C2-wide channel block.
        x_in = x
        x_spec = pl.BlockSpec((None, tl, C2), lambda b, c1, l: (b, l, c1))
    else:
        # Fallback for non-128-aligned C2: materialize the rearranged layout once so
        # the kernel block's lane width equals the full array dim.
        x_in = x.reshape(B, L, 2, C2).transpose(0, 2, 1, 3)  # (B, 2, L, C2)
        x_spec = pl.BlockSpec((None, None, tl, C2), lambda b, c1, l: (b, c1, l, 0))

    out = pl.pallas_call(
        _sep_norm_linear_kernel,
        out_shape=jax.ShapeDtypeStruct((B, 2, L, C2), x.dtype),
        grid=grid,
        in_specs=[
            x_spec,
            pl.BlockSpec((1, C2), lambda b, c1, l: (0, 0)),     # gamma, resident
            pl.BlockSpec((1, C2), lambda b, c1, l: (0, 0)),     # beta, resident
            pl.BlockSpec((C2, C2), lambda b, c1, l: (0, 0)),    # weight, resident
        ],
        out_specs=pl.BlockSpec((None, None, tl, C2), lambda b, c1, l: (b, c1, l, 0)),
        compiler_params=pltpu.CompilerParams(
            dimension_semantics=("parallel", "parallel", "parallel"),
            vmem_limit_bytes=48 * 1024 * 1024,
        ),
    )(x_in, gamma.reshape(1, C2), beta.reshape(1, C2), w_t)

    return out.reshape(B, 2 * L, C2)  # free reshape: (B, 2, L, C2) -> (B, 2L, C2)


def patch_separate_ref(x, gamma, beta, w_t):
    """Pure-JAX reference (mirrors the PyTorch module)."""
    B, L, C = x.shape
    C2 = C // 2
    xr = x.reshape(B, L, 2, C2).transpose(0, 2, 1, 3).reshape(B, 2 * L, C2)
    xr = xr.astype(jnp.float32)
    mean = xr.mean(-1, keepdims=True)
    var = ((xr - mean) ** 2).mean(-1, keepdims=True)
    xn = (xr - mean) / jnp.sqrt(var + _LN_EPS) * gamma + beta
    return xn @ w_t


if __name__ == "__main__":
    # Primary small shape: B=2, L=16, dim=256 -> C2 = 128 (lane-dense fused path).
    B, L, dim = 2, 16, 256
    C2 = dim // 2

    key = jax.random.PRNGKey(0)
    kx, kg, kb, kw = jax.random.split(key, 4)
    x = jax.random.normal(kx, (B, L, dim), dtype=jnp.float32)
    gamma = 1.0 + 0.1 * jax.random.normal(kg, (C2,), dtype=jnp.float32)
    beta = 0.1 * jax.random.normal(kb, (C2,), dtype=jnp.float32)
    w_t = 0.02 * jax.random.normal(kw, (C2, C2), dtype=jnp.float32)  # torch W.T -> (in, out)

    fn = jax.jit(patch_separate)

    # 1) f32, 128-aligned channel half (fused-rearrange fast path).
    out = fn(x, gamma, beta, w_t)
    jax.block_until_ready(out)
    ref = patch_separate_ref(x, gamma, beta, w_t)
    assert out.shape == (B, 2 * L, C2)
    assert jnp.allclose(out, ref, atol=1e-4, rtol=1e-4)

    # 2) f32, non-aligned channel half (C2 = 32) exercises the fallback layout path.
    dim2 = 64
    C22 = dim2 // 2
    x2 = jax.random.normal(kx, (B, 8, dim2), dtype=jnp.float32)
    g2 = jnp.ones((C22,), jnp.float32)
    b2 = jnp.zeros((C22,), jnp.float32)
    w2 = 0.05 * jax.random.normal(kw, (C22, C22), dtype=jnp.float32)
    out2 = fn(x2, g2, b2, w2)
    jax.block_until_ready(out2)
    ref2 = patch_separate_ref(x2, g2, b2, w2)
    assert out2.shape == (B, 16, C22)
    assert jnp.allclose(out2, ref2, atol=1e-4, rtol=1e-4)

    # 3) bf16 operands: native bf16 MXU path with f32 accumulation inside the kernel.
    out_bf16 = fn(
        x.astype(jnp.bfloat16),
        gamma.astype(jnp.bfloat16),
        beta.astype(jnp.bfloat16),
        w_t.astype(jnp.bfloat16),
    )
    jax.block_until_ready(out_bf16)
    assert out_bf16.dtype == jnp.bfloat16
    assert jnp.allclose(out_bf16.astype(jnp.float32), ref, atol=3e-2, rtol=3e-2)

    print("KERNEL_OK")
</pallas_src>

<mosaic_0001>
module attributes {stable_mosaic.version = 11 : i64} {
  func.func @_sep_norm_linear_kernel(%arg0: i32, %arg1: i32, %arg2: i32, %arg3: memref<1x16x128xf32, #tpu.memory_space<vmem>>, %arg4: memref<1x128xf32, #tpu.memory_space<vmem>>, %arg5: memref<1x128xf32, #tpu.memory_space<vmem>>, %arg6: memref<128x128xf32, #tpu.memory_space<vmem>>, %arg7: memref<1x1x16x128xf32, #tpu.memory_space<vmem>>) attributes {dimension_semantics = [#tpu.dimension_semantics<parallel>, #tpu.dimension_semantics<parallel>, #tpu.dimension_semantics<parallel>], iteration_bounds = array<i64: 2, 2, 1>, scalar_prefetch = 0 : i64, scratch_operands = 0 : i64, tpu.core_type = #tpu.core_type<tc>, window_params = [{transform_indices = @transform_0, window_bounds = array<i64: 1, 16, 128>}, {pipeline_mode = #tpu.pipeline_mode<synchronous>, transform_indices = @transform_1, window_bounds = array<i64: 1, 128>}, {pipeline_mode = #tpu.pipeline_mode<synchronous>, transform_indices = @transform_2, window_bounds = array<i64: 1, 128>}, {pipeline_mode = #tpu.pipeline_mode<synchronous>, transform_indices = @transform_3, window_bounds = array<i64: 128, 128>}, {transform_indices = @transform_4, window_bounds = array<i64: 1, 1, 16, 128>}]} {
    %c0 = arith.constant 0 : index
    %c0_0 = arith.constant 0 : index
    %c0_1 = arith.constant 0 : index
    %0 = vector.load %arg3[%c0, %c0_0, %c0_1] : memref<1x16x128xf32, #tpu.memory_space<vmem>>, vector<1x16x128xf32>
    %1 = vector.shape_cast %0 : vector<1x16x128xf32> to vector<16x128xf32>
    %cst = arith.constant dense<0.000000e+00> : vector<16xf32>
    %2 = vector.multi_reduction <add>, %1, %cst [1] : vector<16x128xf32> to vector<16xf32>
    %3 = vector.shape_cast %2 : vector<16xf32> to vector<16x1xf32>
    %cst_2 = arith.constant 1.280000e+02 : f32
    %4 = vector.broadcast %cst_2 : f32 to vector<16x1xf32>
    %5 = arith.divf %3, %4 : vector<16x1xf32>
    %6 = vector.broadcast %5 : vector<16x1xf32> to vector<16x128xf32>
    %7 = arith.subf %1, %6 : vector<16x128xf32>
    %8 = arith.mulf %7, %7 : vector<16x128xf32>
    %cst_3 = arith.constant dense<0.000000e+00> : vector<16xf32>
    %9 = vector.multi_reduction <add>, %8, %cst_3 [1] : vector<16x128xf32> to vector<16xf32>
    %10 = vector.shape_cast %9 : vector<16xf32> to vector<16x1xf32>
    %cst_4 = arith.constant 1.280000e+02 : f32
    %11 = vector.broadcast %cst_4 : f32 to vector<16x1xf32>
    %12 = arith.divf %10, %11 : vector<16x1xf32>
    %cst_5 = arith.constant 9.99999974E-6 : f32
    %13 = vector.broadcast %cst_5 : f32 to vector<16x1xf32>
    %14 = arith.addf %12, %13 : vector<16x1xf32>
    %15 = math.rsqrt %14 : vector<16x1xf32>
    %16 = vector.broadcast %15 : vector<16x1xf32> to vector<16x128xf32>
    %17 = arith.mulf %7, %16 : vector<16x128xf32>
    %c0_6 = arith.constant 0 : index
    %c0_7 = arith.constant 0 : index
    %18 = vector.load %arg4[%c0_6, %c0_7] : memref<1x128xf32, #tpu.memory_space<vmem>>, vector<1x128xf32>
    %19 = vector.broadcast %18 : vector<1x128xf32> to vector<16x128xf32>
    %20 = arith.mulf %17, %19 : vector<16x128xf32>
    %c0_8 = arith.constant 0 : index
    %c0_9 = arith.constant 0 : index
    %21 = vector.load %arg5[%c0_8, %c0_9] : memref<1x128xf32, #tpu.memory_space<vmem>>, vector<1x128xf32>
    %22 = vector.broadcast %21 : vector<1x128xf32> to vector<16x128xf32>
    %23 = arith.addf %20, %22 : vector<16x128xf32>
    %c0_10 = arith.constant 0 : index
    %c0_11 = arith.constant 0 : index
    %24 = vector.load %arg6[%c0_10, %c0_11] : memref<128x128xf32, #tpu.memory_space<vmem>>, vector<128x128xf32>
    %cst_12 = arith.constant dense<0.000000e+00> : vector<16x128xf32>
    %25 = tpu.matmul %23, %24, %cst_12 {dimension_numbers = #tpu.dot_dimension_numbers<[1], [0], [0], [1], [0, 0, 1, 1], [], []>} : vector<16x128xf32>, vector<128x128xf32>, vector<16x128xf32> -> vector<16x128xf32>
    %c0_13 = arith.constant 0 : index
    %c0_14 = arith.constant 0 : index
    %c0_15 = arith.constant 0 : index
    %c0_16 = arith.constant 0 : index
    %26 = vector.load %arg7[%c0_13, %c0_14, %c0_15, %c0_16] : memref<1x1x16x128xf32, #tpu.memory_space<vmem>>, vector<1x1x16x128xf32>
    %27 = vector.shape_cast %26 : vector<1x1x16x128xf32> to vector<16x128xf32>
    %28 = vector.shape_cast %25 : vector<16x128xf32> to vector<1x1x16x128xf32>
    tpu.vector_store %arg7[%c0_13, %c0_14, %c0_15, %c0_16], %28 {strides = array<i32>} : memref<1x1x16x128xf32, #tpu.memory_space<vmem>>, vector<1x1x16x128xf32>,
    return
  }
  func.func @transform_0(%arg0: i32, %arg1: i32, %arg2: i32) -> (i32, i32, i32) {
    %c0_i32 = arith.constant 0 : i32
    return %arg0, %arg2, %arg1 : i32, i32, i32
  }
  func.func @transform_1(%arg0: i32, %arg1: i32, %arg2: i32) -> (i32, i32) {
    %c0_i32 = arith.constant 0 : i32
    %c0_i32_0 = arith.constant 0 : i32
    %c0_i32_1 = arith.constant 0 : i32
    return %c0_i32, %c0_i32_0 : i32, i32
  }
  func.func @transform_2(%arg0: i32, %arg1: i32, %arg2: i32) -> (i32, i32) {
    %c0_i32 = arith.constant 0 : i32
    %c0_i32_0 = arith.constant 0 : i32
    %c0_i32_1 = arith.constant 0 : i32
    return %c0_i32, %c0_i32_0 : i32, i32
  }
  func.func @transform_3(%arg0: i32, %arg1: i32, %arg2: i32) -> (i32, i32) {
    %c0_i32 = arith.constant 0 : i32
    %c0_i32_0 = arith.constant 0 : i32
    %c0_i32_1 = arith.constant 0 : i32
    return %c0_i32, %c0_i32_0 : i32, i32
  }
  func.func @transform_4(%arg0: i32, %arg1: i32, %arg2: i32) -> (i32, i32, i32, i32) {
    %c0_i32 = arith.constant 0 : i32
    %c0_i32_0 = arith.constant 0 : i32
    return %arg0, %arg1, %arg2, %c0_i32 : i32, i32, i32, i32
  }
}

</mosaic_0001>

<bundles_post_ra>
// kernel: patch_separate.1
= control target key start
LH: loop header
LB: loop body
LE: loop exit
PB: predicated region body
PF: predicated region fallthrough
CT: control target
= control target key end

     0   :  { %s1099_s0 = inlined_call_operand.hbm [shape: f32[2,16,256], index: 0, kind: input, shape index: {}]   ;;  %s1100_s1 = inlined_call_operand.vmem [shape: f32[1,128], index: 1, kind: input, shape index: {}]   ;;  %s1101_s2 = inlined_call_operand.vmem [shape: f32[1,128], index: 2, kind: input, shape index: {}]   ;;  %s1102_s3 = inlined_call_operand.hbm [shape: f32[128,128], index: 3, kind: input, shape index: {}]   ;;  %s1103_s4 = inlined_call_operand.hbm [shape: f32[2,2,16,128], index: 4, kind: output, shape index: {}]  }
   0x1   :  { %1115 = sst [smem:[#allocation16_spill]] %s1102_s3 }
   0x2   :  { %9 = vsyncpa [#allocation3], 0 }
   0x3   :  { %11 = vsyncpa [#allocation3 + $0x1], 0 }
   0x4   :  { %12 = vsyncpa [#allocation6], 0 }
   0x5   :  { %13 = vsyncpa [#allocation4], 0 }
   0x6   :  { %15 = vsyncpa [#allocation4 + $0x1], 0  ;;  %s884_s15 = smov 0   ;;  %s886_s16 = smov 0  }
   0x7   :  { %s888_s17 = smov 0   ;;  %s890_s18 = smov 0  }
   0x8   :  { %s892_s19 = smov 0   ;;  %s894_s20 = smov 0  }
   0x9   :  { %s896_s21 = smov 0   ;;  %s898_s22 = smov 0  }
   0xa LB: > { %1116 = sst [smem:[#allocation11_spill]] %s821_s15  ;;  %s524_s23 = sadd.s32 4294967295, %s849_s22   ;;  %s849_s22 = sphi %s898_s22, %s21_s22   ;;  %s845_s21 = sphi %s896_s21, %s1146_s21   ;;  %s841_s20 = sphi %s894_s20, %s1141_s20   ;;  %s837_s19 = sphi %s892_s19, %s1145_s19   ;;  %s833_s18 = sphi %s890_s18, %s1140_s18   ;;  %s829_s17 = sphi %s888_s17, %s1144_s17   ;;  %s825_s16 = sphi %s886_s16, %s1143_s16   ;;  %s821_s15 = sphi %s884_s15, %s1142_s15  }
   0xb   : > { %1117 = sst [smem:[#allocation12_spill]] %s841_s20  ;;  %s525_s24 = sadd.s32 4294967294, %s849_s22  }
   0xc   : > { %1118 = sst [smem:[#allocation13_spill]] %s849_s22  ;;  %p58_p0 = scmp.ne.s32.totalorder %s829_s17, %s825_s16 }
   0xd   : > { %p59_p1 = scmp.eq.s32.totalorder %s849_s22, 0  ;;  %p64_p2 = scmp.ne.s32.totalorder %s825_s16, %s821_s15 }
   0xe   : > { %p932_p3 = scmp.eq.s32.totalorder %s524_s23, 0  ;;  %p155_p4 = scmp.eq.s32.totalorder %s524_s23, 3 }
   0xf   : > { %p936_p5 = por %p59_p1, %p58_p0  ;;  %p161_p6 = scmp.eq.s32.totalorder %s525_s24, 3 }
  0x10   : > { %p942_p7 = por %p932_p3, %p64_p2  ;;  %p946_p8 = por %p155_p4, %p58_p0 }
  0x11   : > { %p950_p9 = por %p161_p6, %p64_p2  ;;  %p526_p10 = scmp.ge.s32.totalorder %s849_s22, 1 }
  0x12   : > { %s1121_s28 = scalar_select %p942_p7, 1, 0 }
  0x13   : > { %s1122_s29 = scalar_select %p946_p8, 1, 0 }
  0x14   : > { %s1123_s30 = scalar_select %p950_p9, 1, 0 }
  0x15   : > { %p168_p11 = scmp.lt.s32.totalorder %s849_s22, 5  ;;  %s851_s6 = smov [#allocation5]  }
  0x16   : > { %1124 = sst [smem:[#allocation14_spill]] %s1123_s30  ;;  %s186_s7 = sshll.u32 %s851_s6, 4  ;;  %s187_s7 = int_to_ptr.vmem [resolvable:$true] %s186_s7 }
  0x17   : > { %p956_p12 = pnand %p526_p10, %p168_p11  ;;  %p618_p0 = scmp.lt.s32.totalorder %s849_s22, 4 }
  0x18   : > { %s706_s10 = scalar_lea.vmem %s187_s7, 2048  ;;  %p714_p9 = scmp.lt.s32.totalorder %s187_s7, %s187_s7 }
  0x19   : > { %s1125_s5 = scalar_select %p956_p12, 1, 0 }
  0x1a   : > { %p605_p13 = pneg %p956_p12  ;;  %p971_p2 = pnand %p618_p0, %p936_p5 }
  0x1b   : > { %p707_p6 = scmp.ne.s32.totalorder %s187_s7, %s706_s10  ;;  %p715_p8 = scmp.lt.s32.totalorder %s706_s10, %s706_s10 }
  0x1c   : > { %p965_p1 = pnand %p605_p13, %p932_p3 }
  0x1d   : > { %p716_p7 = por %p715_p8, %p714_p9 }
  0x1e   : > { %p697_p4 = pneg %p965_p1 }
  0x20   : > { %p709_p10 = pnand %p707_p6, %p697_p4 }
  0x22   : > { %p710_p11 = pneg %p709_p10 }
  0x24   : > { %p717_p12 = pnand %p716_p7, %p710_p11 }
  0x26   : > { %720 = shalt.err (!%p717_p12)
}
  0x27   : > { %s1107_s11 = smov 128   ;;  %s1108_s12 = smov 8  }
  0x28   : > { %s1128_s3 = sld [smem:[#allocation16_spill]]  ;;  %s36_s23 = sadd.s32 1, %s841_s20 }
  0x29   : > { %p38_p5 = scmp.ge.s32.totalorder %s36_s23, 2  ;;  %s40_s24 = sadd.s32 1, %s845_s21 }
  0x2a   : > { %s200_s27 = sand.u32 1, %s829_s17   ;;  %s530_s6 = sshll.u32 %s845_s21, 2 }
  0x2b   : > { %s1148_s23 = smov (%p38_p5, %s36_s23), 0  ;;  %s1150_s24 = smov (!%p38_p5, %s40_s24), %s845_s21 }
  0x2c   : > { %1129 = sst [smem:[#allocation15_spill]] %s1148_s23  ;;  %s47_s10 = ssub.s32 %s841_s20, %s1148_s23 }
  0x2d   : > { %p42_p7 = scmp.ge.s32.totalorder %s1150_s24, 2  ;;  %s529_s8 = sshll.u32 %s200_s27, 4 }
  0x2e   : > { %608 = dma.hbm_to_vmem [thread:$0]  (!%p965_p1), %s1128_s3, 2048, %s187_s7, [#allocation6], %s1107_s11, %s1107_s11, %s1108_s12  }
  0x2f   : > { %s212_s25 = sadd.s32 %s841_s20, %s530_s6  ;;  %s1152_s24 = smov (%p42_p7, %s1150_s24), 0 }
  0x30   : > { %s531_s13 = sshll.u32 %s212_s25, 7  ;;  %s204_s7 = scalar_lea.vmem [#allocation2], %s529_s8 }
  0x31   : > { %s215_s14 = sshll.u32 %s204_s7, 4  ;;  %s44_s11 = ssub.s32 %s845_s21, %s1152_s24  ;;  %s216_s14 = int_to_ptr.vmem [resolvable:$true] %s215_s14 }
  0x32   : > { %s214_s30 = scalar_lea.hbm %s1099_s0, %s531_s13  ;;  %s48_s15 = sor.u32 %s47_s10, %s44_s11 }
  0x33   : > { %p49_p8 = scmp.eq.s32.totalorder %s48_s15, 0  ;;  %s201_s22 = scalar_lea.sflag [#allocation3], %s200_s27 }
  0x34   : > { %p723_p9 = pneg %p971_p2  ;;  %s734_s23 = scalar_lea.vmem %s216_s14, 256 }
  0x35   : > { %p735_p12 = scmp.ne.s32.totalorder %s216_s14, %s734_s23  ;;  %s854_s6 = smov [#allocation2]  }
  0x36   : > { %s739_s20 = sshll.u32 %s854_s6, 4  ;;  %s740_s20 = int_to_ptr.vmem [resolvable:$false] %s739_s20 }
  0x37   : > { %p737_p13 = pnand %p735_p12, %p723_p9  ;;  %s741_s25 = scalar_lea.vmem %s740_s20, 512 }
  0x38   : > { %p742_p1 = scmp.lt.s32.totalorder %s216_s14, %s740_s20  ;;  %p743_p4 = scmp.lt.s32.totalorder %s741_s25, %s734_s23 }
  0x39   : > { %p738_p0 = pneg %p737_p13 }
  0x3a   : > { %p744_p6 = por %p743_p4, %p742_p1 }
  0x3c   : > { %p745_p10 = pnand %p744_p6, %p738_p0 }
  0x3e   : > { %748 = shalt.err (!%p745_p10)
}
  0x3f   : > { %s855_s3 = smov 256   ;;  %s1130_s11 = smov 8  }
  0x40   : > { %s1131_s12 = smov 128   ;;  %s1132_s27 = sadd.s32 1, %s829_s17 }
  0x41   : > { %612 = dma.hbm_to_vmem [thread:$0]  (!%p971_p2), %s214_s30, 256, %s216_s14, %s201_s22, %s855_s3, %s1131_s12, %s1130_s11  }
  0x42   : > { %s1012_s10 = scalar_select %p49_p8, %s829_s17, %s1132_s27  }
  0x43   : > { %p1133_p11 = scmp.ne.s32.totalorder %s1125_s5, 0 }
  0x44   : > { %s1017_s20 = sand.u32 (!%p1133_p11), 1, %s825_s16   ;;  %p1134_p5 = scmp.ne.s32.totalorder (!%p1133_p11), %s1121_s28, 0 }
  0x45   : > { %227 = sbr.rel (%p1133_p11) target bundleno = 597 (0x255), region = 36  ;;  %s533_s9 = sshll.u32 (!%p1133_p11), %s1017_s20, 4 }
  0x46   : > { %s230_s23 = scalar_lea.sflag (!%p1133_p11), [#allocation3], %s1017_s20  ;;  %s233_s8 = scalar_lea.vmem (!%p1133_p11), [#allocation2], %s533_s9 }
  0x4a   : > { %808 = dma.done.wait (%p1134_p5), %s230_s23, 256  }
  0x4b   : > { %810 = vsyncadd (%p1134_p5), %s230_s23, 4294967040 }
  0x4c   : > { %812 = dma.done.wait (%p932_p3), [#allocation6], 2048  }
  0x4d   : > { %814 = vsyncadd (%p932_p3), [#allocation6], 4294965248  ;;  %v264_v0 = vld [vmem:[%s233_s8] sm:$0xff]  ;;  %v265_v1 = vld [vmem:[%s233_s8 + $0x8] sm:$0xff]  ;;  %s539_s30 = sshll.u32 %s833_s18, 1  ;;  %s540_s5 = sshll.u32 %s837_s19, 2 }
  0x4e   : > { %266 = vadd.xlane.f32.xlu0 %v264_v0  ;;  %v322_v2 = vld [vmem:[#allocation5 + $0x78] sm:$0xff]  ;;  %v321_v3 = vld [vmem:[#allocation5 + $0x70] sm:$0xff]  ;;  %v320_v12 = vld [vmem:[#allocation5 + $0x68] sm:$0xff]  ;;  %s415_s13 = sadd.s32 %s540_s5, %s539_s30  ;;  %s261_s7 = scalar_lea.vmem [#allocation7], %s533_s9 }
  0x4f   : > { %562 = vmatprep.subr.mxu0 %v322_v2  ;;  %v319_v13 = vld [vmem:[#allocation5 + $0x60] sm:$0xff]  ;;  %v318_v14 = vld [vmem:[#allocation5 + $0x58] sm:$0xff]  ;;  %v317_v15 = vld [vmem:[#allocation5 + $0x50] sm:$0xff]  ;;  %s418_s14 = sshll.u32 %s261_s7, 4  ;;  %s541_s6 = sshll.u32 %s415_s13, 7  ;;  %s1041_s14 = int_to_ptr.vmem [resolvable:$true] %s418_s14 }
  0x50   : > { %563 = vmatpush3.msra.mxu0 %v322_v2  ;;  %v316_v16 = vld [vmem:[#allocation5 + $0x48] sm:$0xff]  ;;  %v315_v17 = vld [vmem:[#allocation5 + $0x40] sm:$0xff]  ;;  %v314_v18 = vld [vmem:[#allocation5 + $0x38] sm:$0xff]  ;;  %s1046_s11 = scalar_lea.hbm %s1103_s4, %s541_s6  ;;  %s401_s18 = scalar_lea.sflag [#allocation4], %s1017_s20 }
  0x51   : > { %564 = vmatprep.subr.mxu0 %v321_v3  ;;  %v313_v19 = vld [vmem:[#allocation5 + $0x30] sm:$0xff]  ;;  %v312_v20 = vld [vmem:[#allocation5 + $0x28] sm:$0xff]  ;;  %v311_v21 = vld [vmem:[#allocation5 + $0x20] sm:$0xff]  ;;  %s749_s19 = scalar_lea.vmem %s1041_s14, 256  ;;  %p1135_p2 = scmp.ne.s32.totalorder %s1122_s29, 0 }
  0x52   : > { %268 = vadd.xlane.f32.xlu0 %v265_v1  ;;  %565 = vmatpush3.msra.mxu0 %v321_v3  ;;  %v310_v22 = vld [vmem:[#allocation5 + $0x18] sm:$0xff]  ;;  %v309_v23 = vld [vmem:[#allocation5 + $0x10] sm:$0xff]  ;;  %v308_v24 = vld [vmem:[#allocation5 + $0x8] sm:$0xff]  ;;  %p750_p3 = scmp.ne.s32.totalorder %s1041_s14, %s749_s19  ;;  %s856_s12 = smov [#allocation7]  }
  0x53   : > { %566 = vmatprep.subr.mxu0 %v320_v12  ;;  %v307_v25 = vld [vmem:[#allocation5] sm:$0xff]  ;;  %s753_s27 = sshll.u32 %s856_s12, 4  ;;  %s754_s27 = int_to_ptr.vmem [resolvable:$false] %s753_s27 }
  0x54   : > { %567 = vmatpush3.msra.mxu0 %v320_v12  ;;  %v536_v33 = vld [vmem:[%s1100_s1] ss:$0 sm:$0xff]  ;;  %p751_p7 = pnand %p750_p3, %p1135_p2  ;;  %s755_s9 = scalar_lea.vmem %s754_s27, 512 }
  0x55   : > { %568 = vmatprep.subr.mxu0 %v319_v13  ;;  %v537_v35 = vld [vmem:[%s1101_s2] ss:$0 sm:$0xff]  ;;  %p756_p9 = scmp.lt.s32.totalorder %s1041_s14, %s754_s27  ;;  %p757_p12 = scmp.lt.s32.totalorder %s755_s9, %s749_s19 }
  0x56   : > { %569 = vmatpush3.msra.mxu0 %v319_v13  ;;  %p752_p8 = pneg %p751_p7 }
  0x57   : > { %570 = vmatprep.subr.mxu0 %v318_v14  ;;  %p758_p13 = por %p757_p12, %p756_p9 }
  0x58   : > { %571 = vmatpush3.msra.mxu0 %v318_v14 }
  0x59   : > { %572 = vmatprep.subr.mxu0 %v317_v15  ;;  %p759_p0 = pnand %p758_p13, %p752_p8 }
  0x5a   : > { %573 = vmatpush3.msra.mxu0 %v317_v15 }
  0x5b   : > { %574 = vmatprep.subr.mxu0 %v316_v16 }
  0x5c   : > { %575 = vmatpush3.msra.mxu0 %v316_v16 }
  0x5d   : > { %576 = vmatprep.subr.mxu0 %v315_v17 }
  0x5e   : > { %577 = vmatpush3.msra.mxu0 %v315_v17 }
  0x5f   : > { %578 = vmatprep.subr.mxu0 %v314_v18 }
  0x60   : > { %579 = vmatpush3.msra.mxu0 %v314_v18 }
  0x61   : > { %580 = vmatprep.subr.mxu0 %v313_v19 }
  0x62   : > { %581 = vmatpush3.msra.mxu0 %v313_v19 }
  0x63   : > { %582 = vmatprep.subr.mxu0 %v312_v20 }
  0x64   : > { %583 = vmatpush3.msra.mxu0 %v312_v20 }
  0x65   : > { %584 = vmatprep.subr.mxu0 %v311_v21 }
  0x66   : > { %585 = vmatpush3.msra.mxu0 %v311_v21 }
  0x67   : > { %586 = vmatprep.subr.mxu0 %v310_v22 }
  0x68   : > { %587 = vmatpush3.msra.mxu0 %v310_v22 }
  0x69   : > { %588 = vmatprep.subr.mxu0 %v309_v23 }
  0x6a   : > { %589 = vmatpush3.msra.mxu0 %v309_v23 }
  0x6b   : > { %590 = vmatprep.subr.mxu0 %v308_v24 }
  0x6c   : > { %591 = vmatpush3.msra.mxu0 %v308_v24 }
  0x6d   : > { %592 = vmatprep.subr.mxu0 %v307_v25 }
  0x6e   : > { %593 = vmatpush3.msra.mxu0 %v307_v25 }
  0xd7   : > { %v267_v4 = vpop.xlane.xlu0 %266 }
  0xd8   : > { %v271_v5 = vmul.f32 0.0078125, %v267_v4 }
  0xda   : > { %v273_v6 = vsub.f32 %v264_v0, %v271_v5 }
  0xdb   : > { %v269_v7 = vpop.xlane.xlu0 %268 }
  0xdc   : > { %v272_v8 = vmul.f32 0.0078125, %v269_v7  ;;  %v275_v9 = vmul.f32 %v273_v6, %v273_v6 }
  0xde   : > { %v274_v10 = vsub.f32 %v265_v1, %v272_v8  ;;  %277 = vadd.xlane.f32.xlu1 %v275_v9 }
  0xe0   : > { %v276_v11 = vmul.f32 %v274_v10, %v274_v10 }
  0xe2   : > { %279 = vadd.xlane.f32.xlu1 %v276_v11 }
 0x167   : > { %v278_v26 = vpop.xlane.xlu1 %277 }
 0x168   : > { %v281_v27 = vmul.f32 0.0078125, %v278_v26 }
 0x16a   : > { %v283_v28 = vadd.f32 1e-05, %v281_v27 }
 0x16b   : > { %v280_v29 = vpop.xlane.xlu1 %279 }
 0x16c   : > { %691 = vrsqrt.f32 %v283_v28  ;;  %v282_v30 = vmul.f32 0.0078125, %v280_v29 }
 0x16e   : > { %v284_v31 = vadd.f32 1e-05, %v282_v30 }
 0x170   : > { %693 = vrsqrt.f32 %v284_v31 }
 0x179   : > { %v692_v32 = vpop.eup %691 }
 0x17a   : > { %v287_v34 = vmul.f32 %v692_v32, %v273_v6 }
 0x17c   : > { %v296_v36 = vmul.f32 %v536_v33, %v287_v34 }
 0x17d   : > { %v694_v37 = vpop.eup %693 }
 0x17e   : > { %v288_v38 = vmul.f32 %v694_v37, %v274_v10  ;;  %v305_v39 = vadd.f32 %v537_v35, %v296_v36 }
 0x180   : > { %v297_v40 = vmul.f32 %v536_v33, %v288_v38  ;;  %594 = vmatprep.mubr.f32.mxu0 %v305_v39 }
 0x182   : > { %v306_v41 = vadd.f32 %v537_v35, %v297_v40 }
 0x184   : > { %595 = vmatmul.mubr.f32.vlgmr.msra.gmra.mxu0 %v306_v41 }
 0x244   : > { %v596_v42 = vpop.f32.mrf.mxu0 }
 0x245   : > { %399 = vst [vmem:[%s261_s7 + $0x8] sm:$0xff] %v596_v42 }
 0x246   : > { %v389_v43 = vpop.f32.mrf.mxu0 }
 0x247   : > { %398 = vst [vmem:[%s261_s7] sm:$0xff] %v389_v43 }
 0x248   : > { %762 = shalt.err (!%p759_p0)
}
 0x249   : > { %s763_s23 = scalar_lea.hbm %s1046_s11, 256  ;;  %s767_s22 = scalar_lea.hbm %s1103_s4, 1024 }
 0x24a   : > { %p764_p1 = scmp.ne.s32.totalorder %s1046_s11, %s763_s23  ;;  %p768_p10 = scmp.lt.s32.totalorder %s1046_s11, %s1103_s4 }
 0x24b   : > { %p769_p11 = scmp.lt.s32.totalorder %s767_s22, %s763_s23 }
 0x24c   : > { %p765_p4 = pnand %p764_p1, %p1135_p2 }
 0x24d   : > { %p770_p5 = por %p769_p11, %p768_p10 }
 0x24e   : > { %p766_p6 = pneg %p765_p4 }
 0x250   : > { %p771_p3 = pnand %p770_p5, %p766_p6 }
 0x252   : > { %774 = shalt.err (!%p771_p3)
}
 0x253   : > { %s857_s30 = smov 128   ;;  %s858_s5 = smov 8  }
 0x254   : > { %603 = dma.vmem_to_hbm [thread:$0]  (%p1135_p2), %s1041_s14, 256, %s1046_s11, %s401_s18, %s857_s30, %s857_s30, %s858_s5  }
 0x255 PF: > { %s1136_s13 = sld [smem:[#allocation13_spill]] }
 0x256   : > { %s1137_s7 = sld [smem:[#allocation11_spill]] }
 0x257   : > { %s1138_s6 = sld [smem:[#allocation14_spill]] }
 0x25b   : > { %p620_p7 = scmp.ge.s32.totalorder %s1136_s13, 2 }
 0x25c   : > { %s433_s25 = sand.u32 1, %s1137_s7  }
 0x25d   : > { %p1139_p8 = scmp.ne.s32.totalorder %s1138_s6, 0  ;;  %s434_s3 = scalar_lea.sflag [#allocation4], %s433_s25 }
 0x25f   : > { %p614_p9 = pnand %p620_p7, %p1139_p8 }
 0x261   : > { %p615_p12 = pneg %p614_p9 }
 0x263   : > { %816 = dma.done.wait (%p615_p12), %s434_s3, 256  }
 0x264   : > { %818 = vsyncadd (%p615_p12), %s434_s3, 4294967040  ;;  %s21_s22 = sadd.s32 1, %s1136_s13   ;;  %s1140_s18 = sld [smem:[#allocation12_spill]] }
 0x265   : > { %p18_p13 = scmp.ge.s32.totalorder %s21_s22, 6   ;;  %s1141_s20 = sld [smem:[#allocation15_spill]] }
 0x266   : > { %s1142_s15 = smov %s825_s16  ;;  %s1143_s16 = smov %s829_s17 }
 0x267   : > { %s1144_s17 = smov %s1012_s10  ;;  %s1145_s19 = smov %s845_s21 }
 0x268   : > { %s1146_s21 = smov %s1152_s24  ;;  %20 = sbr.rel (!%p18_p13) target bundleno = 10 (0xa), region = 85 }
 0x26d   :  { %439 = vsyncpa [#allocation3], 1 }
 0x26e   :  { %441 = vsyncpa [#allocation3 + $0x1], 1 }
 0x26f   :  { %442 = vsyncpa [#allocation6], 1 }
 0x270   :  { %443 = vsyncpa [#allocation4], 1 }
 0x271   :  { %445 = vsyncpa [#allocation4 + $0x1], 1 }

</bundles_post_ra>
